<compile_context>
chip_gen: v7x
topology: tpu7x:2x2x1
jax: 0.10.0
libtpu: 0.0.40
codegen_flags: <defaults>
</compile_context>

<pallas_src>
import jax
import jax.numpy as jnp
from jax.experimental import pallas as pl
from jax.experimental.pallas import tpu as pltpu


_TILE_CAP = 512                    # max tile edge on the tiled path
_FULL_BLOCK_BYTES = 4 * 1024 * 1024  # per-batch slab size for the full-extent path
_TINY_ELEMS = 8 * 128              # below this total size, jnp.transpose wins


def _transpose_tile_kernel(x_ref, o_ref):
    # Batch dim is squeezed out: x_ref is (tm, tn), o_ref is (tn, tm).
    # A 2D swapaxes on an aligned tile lowers to native XLU vxpose ops.
    o_ref[...] = jnp.swapaxes(x_ref[...], 0, 1)


def _pick_tile(dim, cap=_TILE_CAP):
    """Largest legal tile along `dim`: full extent if it fits, else the
    biggest multiple of 128 (<= cap) that divides dim, else 0 (no tile)."""
    if dim <= cap:
        return dim                       # full-extent along this axis (exempt)
    t = (cap // 128) * 128
    while t >= 128:
        if dim % t == 0:
            return t
        t -= 128
    return 0


def permute_021(x):
    """JAX/Pallas equivalent of torch x.permute(0, 2, 1)."""
    B, M, N = x.shape
    itemsize = jnp.dtype(x.dtype).itemsize

    # Degenerate / tiny shapes (the spec's (1, 2, 2) lands here): launch
    # overhead >> data movement, let XLA handle it.
    if B * M * N <= _TINY_ELEMS:
        return jnp.transpose(x, (0, 2, 1))

    cost = pl.CostEstimate(flops=0, transcendentals=0,
                           bytes_accessed=2 * B * M * N * itemsize)
    slab_bytes = M * N * itemsize

    if slab_bytes <= _FULL_BLOCK_BYTES:
        # Full-extent per-batch block: grid = (B,), any M/N is legal.
        return pl.pallas_call(
            _transpose_tile_kernel,
            out_shape=jax.ShapeDtypeStruct((B, N, M), x.dtype),
            grid=(B,),
            in_specs=[pl.BlockSpec((pl.Squeezed(), M, N), lambda b: (b, 0, 0))],
            out_specs=pl.BlockSpec((pl.Squeezed(), N, M), lambda b: (b, 0, 0)),
            compiler_params=pltpu.CompilerParams(
                dimension_semantics=("parallel",)),
            cost_estimate=cost,
        )(x)

    tm = _pick_tile(M)
    tn = _pick_tile(N)
    if tm and tn:
        # Grid order (B, N-tiles, M-tiles): M-tiles innermost so consecutive
        # steps write contiguous, lane-dense blocks along the output last dim.
        grid = (B, N // tn, M // tm)
        return pl.pallas_call(
            _transpose_tile_kernel,
            out_shape=jax.ShapeDtypeStruct((B, N, M), x.dtype),
            grid=grid,
            in_specs=[pl.BlockSpec((pl.Squeezed(), tm, tn),
                                   lambda b, j, i: (b, i, j))],
            out_specs=pl.BlockSpec((pl.Squeezed(), tn, tm),
                                   lambda b, j, i: (b, j, i)),
            compiler_params=pltpu.CompilerParams(
                dimension_semantics=("parallel", "parallel", "parallel")),
            cost_estimate=cost,
        )(x)

    # Large but unaligned shapes with no legal big tile: XLA transpose.
    return jnp.transpose(x, (0, 2, 1))


class Model:
    """JAX mirror of the PyTorch module (forward only uses the permute)."""

    def __call__(self, x1):
        return permute_021(x1)


if __name__ == "__main__":
    key = jax.random.PRNGKey(0)
    k_small, k_med, k_big = jax.random.split(key, 3)

    model = Model()

    # 1) Spec-faithful input: x1 = torch.randn(1, 2, 2)  -> tiny fast path.
    x_small = jax.random.normal(k_small, (1, 2, 2), dtype=jnp.float32)
    out_small = jax.block_until_ready(model(x_small))
    assert out_small.shape == (1, 2, 2)
    assert jnp.allclose(out_small, jnp.transpose(x_small, (0, 2, 1))), \
        "mismatch vs reference permute (tiny path)"

    # 2) Medium shape -> full-extent Pallas path (grid collapses to (B,)).
    x_med = jax.random.normal(k_med, (2, 256, 384), dtype=jnp.float32)
    out_med = jax.block_until_ready(model(x_med))
    assert out_med.shape == (2, 384, 256)
    assert jnp.allclose(out_med, jnp.transpose(x_med, (0, 2, 1))), \
        "mismatch vs reference permute (full-extent Pallas path)"

    # 3) Larger shape -> tiled Pallas path with 512x512 tiles.
    x_big = jax.random.normal(k_big, (1, 1024, 1536), dtype=jnp.float32)
    out_big = jax.block_until_ready(model(x_big))
    assert out_big.shape == (1, 1536, 1024)
    assert jnp.allclose(out_big, jnp.transpose(x_big, (0, 2, 1))), \
        "mismatch vs reference permute (tiled Pallas path)"

    print("KERNEL_OK")
</pallas_src>

<mosaic_0001>
module attributes {stable_mosaic.version = 11 : i64} {
  func.func @_transpose_tile_kernel(%arg0: i32, %arg1: memref<1x256x384xf32, #tpu.memory_space<vmem>>, %arg2: memref<1x384x256xf32, #tpu.memory_space<vmem>>) attributes {dimension_semantics = [#tpu.dimension_semantics<parallel>], iteration_bounds = array<i64: 2>, scalar_prefetch = 0 : i64, scratch_operands = 0 : i64, tpu.core_type = #tpu.core_type<tc>, window_params = [{transform_indices = @transform_0, window_bounds = array<i64: 1, 256, 384>}, {transform_indices = @transform_1, window_bounds = array<i64: 1, 384, 256>}]} {
    %c0 = arith.constant 0 : index
    %c0_0 = arith.constant 0 : index
    %c0_1 = arith.constant 0 : index
    %0 = vector.load %arg1[%c0, %c0_0, %c0_1] : memref<1x256x384xf32, #tpu.memory_space<vmem>>, vector<1x256x384xf32>
    %1 = vector.shape_cast %0 : vector<1x256x384xf32> to vector<256x384xf32>
    %2 = tpu.transpose %1, [1, 0] : vector<256x384xf32> -> vector<384x256xf32>
    %c0_2 = arith.constant 0 : index
    %c0_3 = arith.constant 0 : index
    %c0_4 = arith.constant 0 : index
    %3 = vector.load %arg2[%c0_2, %c0_3, %c0_4] : memref<1x384x256xf32, #tpu.memory_space<vmem>>, vector<1x384x256xf32>
    %4 = vector.shape_cast %3 : vector<1x384x256xf32> to vector<384x256xf32>
    %5 = vector.shape_cast %2 : vector<384x256xf32> to vector<1x384x256xf32>
    tpu.vector_store %arg2[%c0_2, %c0_3, %c0_4], %5 {strides = array<i32>} : memref<1x384x256xf32, #tpu.memory_space<vmem>>, vector<1x384x256xf32>,
    return
  }
  func.func @transform_0(%arg0: i32) -> (i32, i32, i32) {
    %c0_i32 = arith.constant 0 : i32
    %c0_i32_0 = arith.constant 0 : i32
    %c0_i32_1 = arith.constant 0 : i32
    return %arg0, %c0_i32, %c0_i32_0 : i32, i32, i32
  }
  func.func @transform_1(%arg0: i32) -> (i32, i32, i32) {
    %c0_i32 = arith.constant 0 : i32
    %c0_i32_0 = arith.constant 0 : i32
    %c0_i32_1 = arith.constant 0 : i32
    return %arg0, %c0_i32, %c0_i32_0 : i32, i32, i32
  }
}

</mosaic_0001>

<bundles_post_ra>
// kernel: tpu_custom_call.1
= control target key start
LH: loop header
LB: loop body
LE: loop exit
PB: predicated region body
PF: predicated region fallthrough
CT: control target
= control target key end

     0   :  { %6 = vsyncpa [#allocation3], 0  ;;  %s1139_s0 = inlined_call_operand.hbm [shape: f32[2,256,384], index: 0, kind: input, shape index: {}]   ;;  %s1140_s1 = inlined_call_operand.hbm [shape: f32[2,384,256], index: 1, kind: output, shape index: {}]  }
   0x1   :  { %8 = vsyncpa [#allocation3 + $0x1], 0 }
   0x2   :  { %9 = vsyncpa [#allocation4], 0 }
   0x3   :  { %11 = vsyncpa [#allocation4 + $0x1], 0  ;;  %s782_s6 = smov 0   ;;  %s784_s7 = smov 0  }
   0x4   :  { %s786_s8 = smov 0   ;;  %s788_s9 = smov 0  }
   0x5 LB: > { %s803_s10 = sadd.s32 4294967295, %s764_s9   ;;  %s606_s11 = sadd.s32 4294967294, %s764_s9   ;;  %s764_s9 = sphi %s788_s9, %s1152_s9   ;;  %s760_s8 = sphi %s786_s8, %s1151_s8   ;;  %s756_s7 = sphi %s784_s7, %s1150_s7   ;;  %s752_s6 = sphi %s782_s6, %s1149_s6  }
   0x6   : > { %s807_s12 = sadd.s32 1, %s764_s9   ;;  %s24_s13 = sadd.s32 1, %s760_s8 }
   0x7   : > { %s21_s14 = ssub.s32 %s764_s9, %s807_s12  ;;  %p31_p0 = scmp.ne.s32.totalorder %s760_s8, %s756_s7 }
   0x8   : > { %p22_p1 = scmp.eq.s32.totalorder %s21_s14, 0  ;;  %p32_p2 = scmp.eq.s32.totalorder %s764_s9, 0 }
   0x9   : > { %p37_p3 = scmp.ne.s32.totalorder %s756_s7, %s752_s6  ;;  %p38_p4 = scmp.eq.s32.totalorder %s803_s10, 0 }
   0xa   : > { %s819_s15 = scalar_select %p22_p1, %s760_s8, %s24_s13  }
   0xb   : > { %p33_p5 = por %p32_p2, %p31_p0  ;;  %p821_p6 = por %p38_p4, %p37_p3 }
   0xc   : > { %p61_p7 = scmp.eq.s32.totalorder %s803_s10, 1  ;;  %p67_p8 = scmp.eq.s32.totalorder %s606_s11, 1 }
   0xd   : > { %p630_p10 = scmp.lt.s32.totalorder %s764_s9, 2  ;;  %s87_s19 = sand.u32 1, %s760_s8  }
   0xe   : > { %p828_p11 = por %p61_p7, %p31_p0  ;;  %p832_p12 = por %p67_p8, %p37_p3 }
   0xf   : > { %s615_s20 = smul.u32 12288, %s764_s9  ;;  %p843_p13 = pnand %p630_p10, %p33_p5 }
  0x10   : > { %s1143_s17 = scalar_select %p828_p11, 1, 0 }
  0x11   : > { %s1144_s18 = scalar_select %p832_p12, 1, 0 }
  0x12   : > { %s614_s21 = smul.u32 768, %s87_s19  ;;  %s841_s24 = scalar_lea.hbm %s1139_s0, %s615_s20 }
  0x13   : > { %s849_s28 = scalar_lea.sflag [#allocation3], %s87_s19  ;;  %s668_s29 = scalar_lea.hbm %s841_s24, 12288 }
  0x14   : > { %s91_s26 = scalar_lea.vmem [#allocation2], %s614_s21  ;;  %p669_p0 = scmp.ne.s32.totalorder %s841_s24, %s668_s29 }
  0x15   : > { %s98_s27 = sshll.u32 %s91_s26, 4  ;;  %p670_p1 = pneg %p843_p13  ;;  %s847_s27 = int_to_ptr.vmem [resolvable:$true] %s98_s27 }
  0x16   : > { %s673_s3 = scalar_lea.hbm %s1139_s0, 24576  ;;  %p674_p4 = scmp.lt.u32.totalorder %s841_s24, %s1139_s0 }
  0x17   : > { %p671_p2 = pnand %p670_p1, %p669_p0  ;;  %p675_p5 = scmp.lt.u32.totalorder %s673_s3, %s668_s29 }
  0x18   : > { %p677_p8 = scmp.lt.u32.totalorder %s668_s29, %s841_s24 }
  0x19   : > { %p672_p3 = pneg %p671_p2  ;;  %p676_p7 = por %p675_p5, %p674_p4 }
  0x1b   : > { %p678_p10 = por %p677_p8, %p676_p7 }
  0x1d   : > { %p679_p9 = pnand %p678_p10, %p672_p3 }
  0x1f   : > { %682 = shalt.err (!%p679_p9)
}
  0x20   : > { %s683_s11 = scalar_lea.vmem %s847_s27, 12288  ;;  %s766_s13 = smov [#allocation2]  }
  0x21   : > { %p684_p0 = scmp.ne.s32.totalorder %s847_s27, %s683_s11  ;;  %s688_s14 = sshll.u32 %s766_s13, 4  ;;  %s689_s14 = int_to_ptr.vmem [resolvable:$false] %s688_s14 }
  0x22   : > { %s690_s19 = scalar_lea.vmem %s689_s14, 24576  ;;  %p691_p11 = scmp.lt.s32.totalorder %s847_s27, %s689_s14 }
  0x23   : > { %p686_p2 = pnand %p684_p0, %p670_p1  ;;  %p692_p4 = scmp.lt.s32.totalorder %s690_s19, %s683_s11 }
  0x25   : > { %p687_p12 = pneg %p686_p2  ;;  %p693_p5 = por %p692_p4, %p691_p11 }
  0x27   : > { %p694_p7 = pnand %p693_p5, %p687_p12 }
  0x29   : > { %697 = shalt.err (!%p694_p7)
}
  0x2a   : > { %s767_s20 = smov 384   ;;  %s768_s21 = smov 24  }
  0x2b   : > { %625 = dma.hbm_to_vmem [thread:$0]  (!%p843_p13), %s841_s24, 12288, %s847_s27, %s849_s28, %s767_s20, %s767_s20, %s768_s21  }
  0x2c   : > { %p610_p9 = scmp.ge.s32.totalorder %s764_s9, 1  ;;  %p106_p1 = scmp.lt.s32.totalorder %s764_s9, 3 }
  0x2e   : > { %p107_p3 = pnand %p610_p9, %p106_p1 }
  0x2f   : > { %s880_s22 = sand.u32 (!%p107_p3), 1, %s756_s7  }
  0x30   : > { %110 = sbr.rel (%p107_p3) target bundleno = 389 (0x185), region = 24  ;;  %s113_s26 = scalar_lea.sflag (!%p107_p3), [#allocation3], %s880_s22 }
  0x31   : > { %s616_s23 = smul.u32 (!%p107_p3), 768, %s880_s22 }
  0x33   : > { %s886_s29 = scalar_lea.vmem (!%p107_p3), [#allocation2], %s616_s23 }
  0x37   : > { %743 = dma.done.wait (%p821_p6), %s113_s26, 12288  }
  0x38   : > { %745 = vsyncadd (%p821_p6), %s113_s26, 4294955008  ;;  %v136_v0 = vld [vmem:[%s886_s29 + $0x8] sm:$0xff]  ;;  %v135_v1 = vld [vmem:[%s886_s29] sm:$0xff]  ;;  %s960_s16 = scalar_lea.vmem [#allocation5], %s616_s23  ;;  %s617_s24 = smul.u32 12288, %s803_s10 }
  0x39   : > { %263 = vxpose.xlu1.b32.start [1/16] %v136_v0, 128  ;;  %231 = vxpose.xlu0.b32.start [1/16] %v135_v1, 128  ;;  %v139_v2 = vld [vmem:[%s886_s29 + $0x20] sm:$0xff]  ;;  %v138_v3 = vld [vmem:[%s886_s29 + $0x18] sm:$0xff]  ;;  %v141_v5 = vld [vmem:[%s886_s29 + $0x30] sm:$0xff]  ;;  %s533_s25 = sshll.u32 %s960_s16, 4  ;;  %s520_s10 = scalar_lea.sflag [#allocation4], %s880_s22  ;;  %s1093_s25 = int_to_ptr.vmem [resolvable:$true] %s533_s25 }
  0x3a   : > { %v142_v4 = vld [vmem:[%s886_s29 + $0x38] sm:$0xff]  ;;  %v145_v6 = vld [vmem:[%s886_s29 + $0x50] sm:$0xff]  ;;  %v144_v7 = vld [vmem:[%s886_s29 + $0x48] sm:$0xff]  ;;  %s1091_s30 = scalar_lea.hbm %s1140_s1, %s617_s24  ;;  %s698_s2 = scalar_lea.vmem %s1093_s25, 12288 }
  0x3b   : > { %v148_v8 = vld [vmem:[%s886_s29 + $0x68] sm:$0xff]  ;;  %v147_v9 = vld [vmem:[%s886_s29 + $0x60] sm:$0xff]  ;;  %v150_v11 = vld [vmem:[%s886_s29 + $0x78] sm:$0xff]  ;;  %p699_p6 = scmp.ne.s32.totalorder %s1093_s25, %s698_s2  ;;  %p1146_p11 = scmp.ne.s32.totalorder %s1143_s17, 0 }
  0x3c   : > { %v151_v10 = vld [vmem:[%s886_s29 + $0x80] sm:$0xff]  ;;  %v154_v12 = vld [vmem:[%s886_s29 + $0x98] sm:$0xff]  ;;  %v153_v13 = vld [vmem:[%s886_s29 + $0x90] sm:$0xff]  ;;  %s769_s3 = smov [#allocation5]  }
  0x3d   : > { %264 = vxpose.xlu1.b32.cont [2/16] %v139_v2, 128  ;;  %232 = vxpose.xlu0.b32.cont [2/16] %v138_v3, 128  ;;  %v157_v14 = vld [vmem:[%s886_s29 + $0xb0] sm:$0xff]  ;;  %v156_v15 = vld [vmem:[%s886_s29 + $0xa8] sm:$0xff]  ;;  %v159_v17 = vld [vmem:[%s886_s29 + $0xc0] sm:$0xff]  ;;  %p700_p12 = pnand %p699_p6, %p1146_p11  ;;  %s702_s4 = sshll.u32 %s769_s3, 4  ;;  %s703_s4 = int_to_ptr.vmem [resolvable:$false] %s702_s4 }
  0x3e   : > { %v160_v16 = vld [vmem:[%s886_s29 + $0xc8] sm:$0xff]  ;;  %v163_v18 = vld [vmem:[%s886_s29 + $0xe0] sm:$0xff]  ;;  %v162_v19 = vld [vmem:[%s886_s29 + $0xd8] sm:$0xff]  ;;  %s704_s5 = scalar_lea.vmem %s703_s4, 24576  ;;  %p705_p8 = scmp.lt.s32.totalorder %s1093_s25, %s703_s4 }
  0x3f   : > { %v166_v20 = vld [vmem:[%s886_s29 + $0xf8] sm:$0xff]  ;;  %v165_v21 = vld [vmem:[%s886_s29 + $0xf0] sm:$0xff]  ;;  %v168_v23 = vld [vmem:[%s886_s29 + $0x108] sm:$0xff]  ;;  %p701_p13 = pneg %p700_p12  ;;  %p706_p10 = scmp.lt.s32.totalorder %s704_s5, %s698_s2 }
  0x40   : > { %v169_v22 = vld [vmem:[%s886_s29 + $0x110] sm:$0xff]  ;;  %v172_v24 = vld [vmem:[%s886_s29 + $0x128] sm:$0xff]  ;;  %v171_v25 = vld [vmem:[%s886_s29 + $0x120] sm:$0xff] }
  0x41   : > { %265 = vxpose.xlu1.b32.cont [3/16] %v142_v4, 128  ;;  %233 = vxpose.xlu0.b32.cont [3/16] %v141_v5, 128  ;;  %v175_v26 = vld [vmem:[%s886_s29 + $0x140] sm:$0xff]  ;;  %v174_v27 = vld [vmem:[%s886_s29 + $0x138] sm:$0xff]  ;;  %v177_v29 = vld [vmem:[%s886_s29 + $0x150] sm:$0xff]  ;;  %p707_p0 = por %p706_p10, %p705_p8 }
  0x42   : > { %v178_v28 = vld [vmem:[%s886_s29 + $0x158] sm:$0xff]  ;;  %v181_v30 = vld [vmem:[%s886_s29 + $0x170] sm:$0xff]  ;;  %v180_v31 = vld [vmem:[%s886_s29 + $0x168] sm:$0xff] }
  0x43   : > { %v183_v32 = vld [vmem:[%s886_s29 + $0x180] sm:$0xff]  ;;  %v137_v33 = vld [vmem:[%s886_s29 + $0x10] sm:$0xff]  ;;  %v186_v34 = vld [vmem:[%s886_s29 + $0x198] sm:$0xff]  ;;  %p708_p2 = pnand %p707_p0, %p701_p13 }
  0x44   : > { %v140_v35 = vld [vmem:[%s886_s29 + $0x28] sm:$0xff]  ;;  %v189_v36 = vld [vmem:[%s886_s29 + $0x1b0] sm:$0xff]  ;;  %v143_v37 = vld [vmem:[%s886_s29 + $0x40] sm:$0xff] }
  0x45   : > { %266 = vxpose.xlu1.b32.cont [4/16] %v145_v6, 128  ;;  %234 = vxpose.xlu0.b32.cont [4/16] %v144_v7, 128  ;;  %v192_v38 = vld [vmem:[%s886_s29 + $0x1c8] sm:$0xff]  ;;  %v146_v39 = vld [vmem:[%s886_s29 + $0x58] sm:$0xff]  ;;  %v195_v40 = vld [vmem:[%s886_s29 + $0x1e0] sm:$0xff] }
  0x46   : > { %v149_v41 = vld [vmem:[%s886_s29 + $0x70] sm:$0xff]  ;;  %v198_v42 = vld [vmem:[%s886_s29 + $0x1f8] sm:$0xff]  ;;  %v152_v43 = vld [vmem:[%s886_s29 + $0x88] sm:$0xff] }
  0x47   : > { %v201_v44 = vld [vmem:[%s886_s29 + $0x210] sm:$0xff]  ;;  %v155_v45 = vld [vmem:[%s886_s29 + $0xa0] sm:$0xff]  ;;  %v204_v46 = vld [vmem:[%s886_s29 + $0x228] sm:$0xff] }
  0x48   : > { %v158_v47 = vld [vmem:[%s886_s29 + $0xb8] sm:$0xff]  ;;  %v207_v48 = vld [vmem:[%s886_s29 + $0x240] sm:$0xff]  ;;  %v161_v49 = vld [vmem:[%s886_s29 + $0xd0] sm:$0xff] }
  0x49   : > { %267 = vxpose.xlu1.b32.cont [5/16] %v148_v8, 128  ;;  %235 = vxpose.xlu0.b32.cont [5/16] %v147_v9, 128  ;;  %v210_v50 = vld [vmem:[%s886_s29 + $0x258] sm:$0xff]  ;;  %v164_v51 = vld [vmem:[%s886_s29 + $0xe8] sm:$0xff]  ;;  %v213_v52 = vld [vmem:[%s886_s29 + $0x270] sm:$0xff] }
  0x4a   : > { %v167_v53 = vld [vmem:[%s886_s29 + $0x100] sm:$0xff]  ;;  %v216_v54 = vld [vmem:[%s886_s29 + $0x288] sm:$0xff]  ;;  %v170_v55 = vld [vmem:[%s886_s29 + $0x118] sm:$0xff] }
  0x4b   : > { %v219_v56 = vld [vmem:[%s886_s29 + $0x2a0] sm:$0xff]  ;;  %v173_v57 = vld [vmem:[%s886_s29 + $0x130] sm:$0xff]  ;;  %v222_v58 = vld [vmem:[%s886_s29 + $0x2b8] sm:$0xff] }
  0x4c   : > { %v176_v59 = vld [vmem:[%s886_s29 + $0x148] sm:$0xff]  ;;  %v225_v60 = vld [vmem:[%s886_s29 + $0x2d0] sm:$0xff]  ;;  %v179_v61 = vld [vmem:[%s886_s29 + $0x160] sm:$0xff] }
  0x4d   : > { %268 = vxpose.xlu1.b32.cont [6/16] %v151_v10, 128  ;;  %236 = vxpose.xlu0.b32.cont [6/16] %v150_v11, 128  ;;  %v228_v62 = vld [vmem:[%s886_s29 + $0x2e8] sm:$0xff]  ;;  %v182_v63 = vld [vmem:[%s886_s29 + $0x178] sm:$0xff]  ;;  %v185_v0 = vld [vmem:[%s886_s29 + $0x190] sm:$0xff] }
  0x4e   : > { %v184_v1 = vld [vmem:[%s886_s29 + $0x188] sm:$0xff]  ;;  %v187_v5 = vld [vmem:[%s886_s29 + $0x1a0] sm:$0xff]  ;;  %v190_v9 = vld [vmem:[%s886_s29 + $0x1b8] sm:$0xff] }
  0x4f   : > { %v188_v4 = vld [vmem:[%s886_s29 + $0x1a8] sm:$0xff]  ;;  %v191_v8 = vld [vmem:[%s886_s29 + $0x1c0] sm:$0xff] }
  0x51   : > { %269 = vxpose.xlu1.b32.cont [7/16] %v154_v12, 128  ;;  %237 = vxpose.xlu0.b32.cont [7/16] %v153_v13, 128  ;;  %v194_v12 = vld [vmem:[%s886_s29 + $0x1d8] sm:$0xff]  ;;  %v193_v13 = vld [vmem:[%s886_s29 + $0x1d0] sm:$0xff] }
  0x55   : > { %270 = vxpose.xlu1.b32.cont [8/16] %v157_v14, 128  ;;  %238 = vxpose.xlu0.b32.cont [8/16] %v156_v15, 128 }
  0x59   : > { %271 = vxpose.xlu1.b32.cont [9/16] %v160_v16, 128  ;;  %239 = vxpose.xlu0.b32.cont [9/16] %v159_v17, 128  ;;  %v197_v16 = vld [vmem:[%s886_s29 + $0x1f0] sm:$0xff]  ;;  %v196_v17 = vld [vmem:[%s886_s29 + $0x1e8] sm:$0xff] }
  0x5d   : > { %272 = vxpose.xlu1.b32.cont [10/16] %v163_v18, 128  ;;  %240 = vxpose.xlu0.b32.cont [10/16] %v162_v19, 128 }
  0x61   : > { %273 = vxpose.xlu1.b32.cont [11/16] %v166_v20, 128  ;;  %241 = vxpose.xlu0.b32.cont [11/16] %v165_v21, 128  ;;  %v200_v20 = vld [vmem:[%s886_s29 + $0x208] sm:$0xff]  ;;  %v199_v21 = vld [vmem:[%s886_s29 + $0x200] sm:$0xff] }
  0x65   : > { %274 = vxpose.xlu1.b32.cont [12/16] %v169_v22, 128  ;;  %242 = vxpose.xlu0.b32.cont [12/16] %v168_v23, 128 }
  0x69   : > { %275 = vxpose.xlu1.b32.cont [13/16] %v172_v24, 128  ;;  %243 = vxpose.xlu0.b32.cont [13/16] %v171_v25, 128  ;;  %v203_v24 = vld [vmem:[%s886_s29 + $0x220] sm:$0xff]  ;;  %v202_v25 = vld [vmem:[%s886_s29 + $0x218] sm:$0xff] }
  0x6d   : > { %276 = vxpose.xlu1.b32.cont [14/16] %v175_v26, 128  ;;  %244 = vxpose.xlu0.b32.cont [14/16] %v174_v27, 128 }
  0x71   : > { %277 = vxpose.xlu1.b32.cont [15/16] %v178_v28, 128  ;;  %245 = vxpose.xlu0.b32.cont [15/16] %v177_v29, 128  ;;  %v206_v28 = vld [vmem:[%s886_s29 + $0x238] sm:$0xff]  ;;  %v205_v29 = vld [vmem:[%s886_s29 + $0x230] sm:$0xff] }
  0x75   : > { %278 = vxpose.xlu1.b32.end [16/16] %v181_v30, 128  ;;  %246 = vxpose.xlu0.b32.end [16/16] %v180_v31, 128 }
  0x79   : > { %327 = vxpose.xlu1.b32.start [1/16] %v183_v32, 128  ;;  %295 = vxpose.xlu0.b32.start [1/16] %v137_v33, 128  ;;  %v209_v32 = vld [vmem:[%s886_s29 + $0x250] sm:$0xff]  ;;  %v208_v33 = vld [vmem:[%s886_s29 + $0x248] sm:$0xff] }
  0x7d   : > { %328 = vxpose.xlu1.b32.cont [2/16] %v186_v34, 128  ;;  %296 = vxpose.xlu0.b32.cont [2/16] %v140_v35, 128 }
  0x81   : > { %329 = vxpose.xlu1.b32.cont [3/16] %v189_v36, 128  ;;  %297 = vxpose.xlu0.b32.cont [3/16] %v143_v37, 128  ;;  %v212_v36 = vld [vmem:[%s886_s29 + $0x268] sm:$0xff]  ;;  %v211_v37 = vld [vmem:[%s886_s29 + $0x260] sm:$0xff] }
  0x85   : > { %330 = vxpose.xlu1.b32.cont [4/16] %v192_v38, 128  ;;  %298 = vxpose.xlu0.b32.cont [4/16] %v146_v39, 128 }
  0x89   : > { %331 = vxpose.xlu1.b32.cont [5/16] %v195_v40, 128  ;;  %299 = vxpose.xlu0.b32.cont [5/16] %v149_v41, 128  ;;  %v215_v40 = vld [vmem:[%s886_s29 + $0x280] sm:$0xff]  ;;  %v214_v41 = vld [vmem:[%s886_s29 + $0x278] sm:$0xff] }
  0x8d   : > { %332 = vxpose.xlu1.b32.cont [6/16] %v198_v42, 128  ;;  %300 = vxpose.xlu0.b32.cont [6/16] %v152_v43, 128 }
  0x91   : > { %333 = vxpose.xlu1.b32.cont [7/16] %v201_v44, 128  ;;  %301 = vxpose.xlu0.b32.cont [7/16] %v155_v45, 128  ;;  %v218_v44 = vld [vmem:[%s886_s29 + $0x298] sm:$0xff]  ;;  %v217_v45 = vld [vmem:[%s886_s29 + $0x290] sm:$0xff] }
  0x95   : > { %334 = vxpose.xlu1.b32.cont [8/16] %v204_v46, 128  ;;  %302 = vxpose.xlu0.b32.cont [8/16] %v158_v47, 128 }
  0x99   : > { %335 = vxpose.xlu1.b32.cont [9/16] %v207_v48, 128  ;;  %303 = vxpose.xlu0.b32.cont [9/16] %v161_v49, 128  ;;  %v221_v48 = vld [vmem:[%s886_s29 + $0x2b0] sm:$0xff]  ;;  %v220_v49 = vld [vmem:[%s886_s29 + $0x2a8] sm:$0xff] }
  0x9d   : > { %336 = vxpose.xlu1.b32.cont [10/16] %v210_v50, 128  ;;  %304 = vxpose.xlu0.b32.cont [10/16] %v164_v51, 128 }
  0xa1   : > { %337 = vxpose.xlu1.b32.cont [11/16] %v213_v52, 128  ;;  %305 = vxpose.xlu0.b32.cont [11/16] %v167_v53, 128  ;;  %v224_v52 = vld [vmem:[%s886_s29 + $0x2c8] sm:$0xff]  ;;  %v223_v53 = vld [vmem:[%s886_s29 + $0x2c0] sm:$0xff] }
  0xa5   : > { %338 = vxpose.xlu1.b32.cont [12/16] %v216_v54, 128  ;;  %306 = vxpose.xlu0.b32.cont [12/16] %v170_v55, 128 }
  0xa9   : > { %339 = vxpose.xlu1.b32.cont [13/16] %v219_v56, 128  ;;  %307 = vxpose.xlu0.b32.cont [13/16] %v173_v57, 128  ;;  %v227_v56 = vld [vmem:[%s886_s29 + $0x2e0] sm:$0xff]  ;;  %v226_v57 = vld [vmem:[%s886_s29 + $0x2d8] sm:$0xff] }
  0xad   : > { %340 = vxpose.xlu1.b32.cont [14/16] %v222_v58, 128  ;;  %308 = vxpose.xlu0.b32.cont [14/16] %v176_v59, 128 }
  0xb1   : > { %341 = vxpose.xlu1.b32.cont [15/16] %v225_v60, 128  ;;  %309 = vxpose.xlu0.b32.cont [15/16] %v179_v61, 128  ;;  %v230_v60 = vld [vmem:[%s886_s29 + $0x2f8] sm:$0xff]  ;;  %v229_v61 = vld [vmem:[%s886_s29 + $0x2f0] sm:$0xff] }
  0xb5   : > { %342 = vxpose.xlu1.b32.end [16/16] %v228_v62, 128  ;;  %310 = vxpose.xlu0.b32.end [16/16] %v182_v63, 128 }
  0xb9   : > { %391 = vxpose.xlu1.b32.start [1/16] %v185_v0, 128  ;;  %v279_v2 = vpop.trf.xlu1  ;;  %359 = vxpose.xlu0.b32.start [1/16] %v184_v1, 128  ;;  %v247_v3 = vpop.trf.xlu0 }
  0xba   : > { %455 = vst [vmem:[%s960_s16 + $0x100] sm:$0xff] %v279_v2  ;;  %423 = vst [vmem:[%s960_s16] sm:$0xff] %v247_v3 }
  0xbd   : > { %392 = vxpose.xlu1.b32.cont [2/16] %v188_v4, 128  ;;  %v280_v6 = vpop.trf.xlu1  ;;  %360 = vxpose.xlu0.b32.cont [2/16] %v187_v5, 128  ;;  %v248_v7 = vpop.trf.xlu0 }
  0xbe   : > { %457 = vst [vmem:[%s960_s16 + $0x110] sm:$0xff] %v280_v6  ;;  %425 = vst [vmem:[%s960_s16 + $0x10] sm:$0xff] %v248_v7 }
  0xc1   : > { %393 = vxpose.xlu1.b32.cont [3/16] %v191_v8, 128  ;;  %v281_v10 = vpop.trf.xlu1  ;;  %361 = vxpose.xlu0.b32.cont [3/16] %v190_v9, 128  ;;  %v249_v11 = vpop.trf.xlu0 }
  0xc2   : > { %459 = vst [vmem:[%s960_s16 + $0x120] sm:$0xff] %v281_v10  ;;  %427 = vst [vmem:[%s960_s16 + $0x20] sm:$0xff] %v249_v11 }
  0xc5   : > { %394 = vxpose.xlu1.b32.cont [4/16] %v194_v12, 128  ;;  %v282_v14 = vpop.trf.xlu1  ;;  %362 = vxpose.xlu0.b32.cont [4/16] %v193_v13, 128  ;;  %v250_v15 = vpop.trf.xlu0 }
  0xc6   : > { %461 = vst [vmem:[%s960_s16 + $0x130] sm:$0xff] %v282_v14  ;;  %429 = vst [vmem:[%s960_s16 + $0x30] sm:$0xff] %v250_v15 }
  0xc9   : > { %395 = vxpose.xlu1.b32.cont [5/16] %v197_v16, 128  ;;  %v283_v18 = vpop.trf.xlu1  ;;  %363 = vxpose.xlu0.b32.cont [5/16] %v196_v17, 128  ;;  %v251_v19 = vpop.trf.xlu0 }
  0xca   : > { %463 = vst [vmem:[%s960_s16 + $0x140] sm:$0xff] %v283_v18  ;;  %431 = vst [vmem:[%s960_s16 + $0x40] sm:$0xff] %v251_v19 }
  0xcd   : > { %396 = vxpose.xlu1.b32.cont [6/16] %v200_v20, 128  ;;  %v284_v22 = vpop.trf.xlu1  ;;  %364 = vxpose.xlu0.b32.cont [6/16] %v199_v21, 128  ;;  %v252_v23 = vpop.trf.xlu0 }
  0xce   : > { %465 = vst [vmem:[%s960_s16 + $0x150] sm:$0xff] %v284_v22  ;;  %433 = vst [vmem:[%s960_s16 + $0x50] sm:$0xff] %v252_v23 }
  0xd1   : > { %397 = vxpose.xlu1.b32.cont [7/16] %v203_v24, 128  ;;  %v285_v26 = vpop.trf.xlu1  ;;  %365 = vxpose.xlu0.b32.cont [7/16] %v202_v25, 128  ;;  %v253_v27 = vpop.trf.xlu0 }
  0xd2   : > { %467 = vst [vmem:[%s960_s16 + $0x160] sm:$0xff] %v285_v26  ;;  %435 = vst [vmem:[%s960_s16 + $0x60] sm:$0xff] %v253_v27 }
  0xd5   : > { %398 = vxpose.xlu1.b32.cont [8/16] %v206_v28, 128  ;;  %v286_v30 = vpop.trf.xlu1  ;;  %366 = vxpose.xlu0.b32.cont [8/16] %v205_v29, 128  ;;  %v254_v31 = vpop.trf.xlu0 }
  0xd6   : > { %469 = vst [vmem:[%s960_s16 + $0x170] sm:$0xff] %v286_v30  ;;  %437 = vst [vmem:[%s960_s16 + $0x70] sm:$0xff] %v254_v31 }
  0xd9   : > { %399 = vxpose.xlu1.b32.cont [9/16] %v209_v32, 128  ;;  %v287_v34 = vpop.trf.xlu1  ;;  %367 = vxpose.xlu0.b32.cont [9/16] %v208_v33, 128  ;;  %v255_v35 = vpop.trf.xlu0 }
  0xda   : > { %471 = vst [vmem:[%s960_s16 + $0x180] sm:$0xff] %v287_v34  ;;  %439 = vst [vmem:[%s960_s16 + $0x80] sm:$0xff] %v255_v35 }
  0xdd   : > { %400 = vxpose.xlu1.b32.cont [10/16] %v212_v36, 128  ;;  %v288_v38 = vpop.trf.xlu1  ;;  %368 = vxpose.xlu0.b32.cont [10/16] %v211_v37, 128  ;;  %v256_v39 = vpop.trf.xlu0 }
  0xde   : > { %473 = vst [vmem:[%s960_s16 + $0x190] sm:$0xff] %v288_v38  ;;  %441 = vst [vmem:[%s960_s16 + $0x90] sm:$0xff] %v256_v39 }
  0xe1   : > { %401 = vxpose.xlu1.b32.cont [11/16] %v215_v40, 128  ;;  %v289_v42 = vpop.trf.xlu1  ;;  %369 = vxpose.xlu0.b32.cont [11/16] %v214_v41, 128  ;;  %v257_v43 = vpop.trf.xlu0 }
  0xe2   : > { %475 = vst [vmem:[%s960_s16 + $0x1a0] sm:$0xff] %v289_v42  ;;  %443 = vst [vmem:[%s960_s16 + $0xa0] sm:$0xff] %v257_v43 }
  0xe5   : > { %402 = vxpose.xlu1.b32.cont [12/16] %v218_v44, 128  ;;  %v290_v46 = vpop.trf.xlu1  ;;  %370 = vxpose.xlu0.b32.cont [12/16] %v217_v45, 128  ;;  %v258_v47 = vpop.trf.xlu0 }
  0xe6   : > { %477 = vst [vmem:[%s960_s16 + $0x1b0] sm:$0xff] %v290_v46  ;;  %445 = vst [vmem:[%s960_s16 + $0xb0] sm:$0xff] %v258_v47 }
  0xe9   : > { %403 = vxpose.xlu1.b32.cont [13/16] %v221_v48, 128  ;;  %v291_v50 = vpop.trf.xlu1  ;;  %371 = vxpose.xlu0.b32.cont [13/16] %v220_v49, 128  ;;  %v259_v51 = vpop.trf.xlu0 }
  0xea   : > { %479 = vst [vmem:[%s960_s16 + $0x1c0] sm:$0xff] %v291_v50  ;;  %447 = vst [vmem:[%s960_s16 + $0xc0] sm:$0xff] %v259_v51 }
  0xed   : > { %404 = vxpose.xlu1.b32.cont [14/16] %v224_v52, 128  ;;  %v292_v54 = vpop.trf.xlu1  ;;  %372 = vxpose.xlu0.b32.cont [14/16] %v223_v53, 128  ;;  %v260_v55 = vpop.trf.xlu0 }
  0xee   : > { %481 = vst [vmem:[%s960_s16 + $0x1d0] sm:$0xff] %v292_v54  ;;  %449 = vst [vmem:[%s960_s16 + $0xd0] sm:$0xff] %v260_v55 }
  0xf1   : > { %405 = vxpose.xlu1.b32.cont [15/16] %v227_v56, 128  ;;  %v293_v58 = vpop.trf.xlu1  ;;  %373 = vxpose.xlu0.b32.cont [15/16] %v226_v57, 128  ;;  %v261_v59 = vpop.trf.xlu0 }
  0xf2   : > { %483 = vst [vmem:[%s960_s16 + $0x1e0] sm:$0xff] %v293_v58  ;;  %451 = vst [vmem:[%s960_s16 + $0xe0] sm:$0xff] %v261_v59 }
  0xf5   : > { %406 = vxpose.xlu1.b32.end [16/16] %v230_v60, 128  ;;  %v294_v62 = vpop.trf.xlu1  ;;  %374 = vxpose.xlu0.b32.end [16/16] %v229_v61, 128  ;;  %v262_v63 = vpop.trf.xlu0 }
  0xf6   : > { %485 = vst [vmem:[%s960_s16 + $0x1f0] sm:$0xff] %v294_v62  ;;  %453 = vst [vmem:[%s960_s16 + $0xf0] sm:$0xff] %v262_v63 }
  0xf9   : > { %v343_v0 = vpop.trf.xlu1  ;;  %v311_v1 = vpop.trf.xlu0 }
  0xfa   : > { %424 = vst [vmem:[%s960_s16 + $0x8] sm:$0xff] %v343_v0  ;;  %487 = vst [vmem:[%s960_s16 + $0x200] sm:$0xff] %v311_v1 }
  0xfd   : > { %v344_v2 = vpop.trf.xlu1  ;;  %v312_v3 = vpop.trf.xlu0 }
  0xfe   : > { %426 = vst [vmem:[%s960_s16 + $0x18] sm:$0xff] %v344_v2  ;;  %489 = vst [vmem:[%s960_s16 + $0x210] sm:$0xff] %v312_v3 }
 0x101   : > { %v345_v4 = vpop.trf.xlu1  ;;  %v313_v5 = vpop.trf.xlu0 }
 0x102   : > { %428 = vst [vmem:[%s960_s16 + $0x28] sm:$0xff] %v345_v4  ;;  %491 = vst [vmem:[%s960_s16 + $0x220] sm:$0xff] %v313_v5 }
 0x105   : > { %v346_v6 = vpop.trf.xlu1  ;;  %v314_v7 = vpop.trf.xlu0 }
 0x106   : > { %430 = vst [vmem:[%s960_s16 + $0x38] sm:$0xff] %v346_v6  ;;  %493 = vst [vmem:[%s960_s16 + $0x230] sm:$0xff] %v314_v7 }
 0x109   : > { %v347_v8 = vpop.trf.xlu1  ;;  %v315_v9 = vpop.trf.xlu0 }
 0x10a   : > { %432 = vst [vmem:[%s960_s16 + $0x48] sm:$0xff] %v347_v8  ;;  %495 = vst [vmem:[%s960_s16 + $0x240] sm:$0xff] %v315_v9 }
 0x10d   : > { %v348_v10 = vpop.trf.xlu1  ;;  %v316_v11 = vpop.trf.xlu0 }
 0x10e   : > { %434 = vst [vmem:[%s960_s16 + $0x58] sm:$0xff] %v348_v10  ;;  %497 = vst [vmem:[%s960_s16 + $0x250] sm:$0xff] %v316_v11 }
 0x111   : > { %v349_v12 = vpop.trf.xlu1  ;;  %v317_v13 = vpop.trf.xlu0 }
 0x112   : > { %436 = vst [vmem:[%s960_s16 + $0x68] sm:$0xff] %v349_v12  ;;  %499 = vst [vmem:[%s960_s16 + $0x260] sm:$0xff] %v317_v13 }
 0x115   : > { %v350_v14 = vpop.trf.xlu1  ;;  %v318_v15 = vpop.trf.xlu0 }
 0x116   : > { %438 = vst [vmem:[%s960_s16 + $0x78] sm:$0xff] %v350_v14  ;;  %501 = vst [vmem:[%s960_s16 + $0x270] sm:$0xff] %v318_v15 }
 0x119   : > { %v351_v16 = vpop.trf.xlu1  ;;  %v319_v17 = vpop.trf.xlu0 }
 0x11a   : > { %440 = vst [vmem:[%s960_s16 + $0x88] sm:$0xff] %v351_v16  ;;  %503 = vst [vmem:[%s960_s16 + $0x280] sm:$0xff] %v319_v17 }
 0x11d   : > { %v352_v18 = vpop.trf.xlu1  ;;  %v320_v19 = vpop.trf.xlu0 }
 0x11e   : > { %442 = vst [vmem:[%s960_s16 + $0x98] sm:$0xff] %v352_v18  ;;  %505 = vst [vmem:[%s960_s16 + $0x290] sm:$0xff] %v320_v19 }
 0x121   : > { %v353_v20 = vpop.trf.xlu1  ;;  %v321_v21 = vpop.trf.xlu0 }
 0x122   : > { %444 = vst [vmem:[%s960_s16 + $0xa8] sm:$0xff] %v353_v20  ;;  %507 = vst [vmem:[%s960_s16 + $0x2a0] sm:$0xff] %v321_v21 }
 0x125   : > { %v354_v22 = vpop.trf.xlu1  ;;  %v322_v23 = vpop.trf.xlu0 }
 0x126   : > { %446 = vst [vmem:[%s960_s16 + $0xb8] sm:$0xff] %v354_v22  ;;  %509 = vst [vmem:[%s960_s16 + $0x2b0] sm:$0xff] %v322_v23 }
 0x129   : > { %v355_v24 = vpop.trf.xlu1  ;;  %v323_v25 = vpop.trf.xlu0 }
 0x12a   : > { %448 = vst [vmem:[%s960_s16 + $0xc8] sm:$0xff] %v355_v24  ;;  %511 = vst [vmem:[%s960_s16 + $0x2c0] sm:$0xff] %v323_v25 }
 0x12d   : > { %v356_v26 = vpop.trf.xlu1  ;;  %v324_v27 = vpop.trf.xlu0 }
 0x12e   : > { %450 = vst [vmem:[%s960_s16 + $0xd8] sm:$0xff] %v356_v26  ;;  %513 = vst [vmem:[%s960_s16 + $0x2d0] sm:$0xff] %v324_v27 }
 0x131   : > { %v357_v28 = vpop.trf.xlu1  ;;  %v325_v29 = vpop.trf.xlu0 }
 0x132   : > { %452 = vst [vmem:[%s960_s16 + $0xe8] sm:$0xff] %v357_v28  ;;  %515 = vst [vmem:[%s960_s16 + $0x2e0] sm:$0xff] %v325_v29 }
 0x135   : > { %v358_v30 = vpop.trf.xlu1  ;;  %v326_v31 = vpop.trf.xlu0 }
 0x136   : > { %454 = vst [vmem:[%s960_s16 + $0xf8] sm:$0xff] %v358_v30  ;;  %517 = vst [vmem:[%s960_s16 + $0x2f0] sm:$0xff] %v326_v31 }
 0x139   : > { %v407_v32 = vpop.trf.xlu1  ;;  %v375_v33 = vpop.trf.xlu0 }
 0x13a   : > { %488 = vst [vmem:[%s960_s16 + $0x208] sm:$0xff] %v407_v32  ;;  %456 = vst [vmem:[%s960_s16 + $0x108] sm:$0xff] %v375_v33 }
 0x13d   : > { %v408_v34 = vpop.trf.xlu1  ;;  %v376_v35 = vpop.trf.xlu0 }
 0x13e   : > { %490 = vst [vmem:[%s960_s16 + $0x218] sm:$0xff] %v408_v34  ;;  %458 = vst [vmem:[%s960_s16 + $0x118] sm:$0xff] %v376_v35 }
 0x141   : > { %v409_v36 = vpop.trf.xlu1  ;;  %v377_v37 = vpop.trf.xlu0 }
 0x142   : > { %492 = vst [vmem:[%s960_s16 + $0x228] sm:$0xff] %v409_v36  ;;  %460 = vst [vmem:[%s960_s16 + $0x128] sm:$0xff] %v377_v37 }
 0x145   : > { %v410_v38 = vpop.trf.xlu1  ;;  %v378_v39 = vpop.trf.xlu0 }
 0x146   : > { %494 = vst [vmem:[%s960_s16 + $0x238] sm:$0xff] %v410_v38  ;;  %462 = vst [vmem:[%s960_s16 + $0x138] sm:$0xff] %v378_v39 }
 0x149   : > { %v411_v40 = vpop.trf.xlu1  ;;  %v379_v41 = vpop.trf.xlu0 }
 0x14a   : > { %496 = vst [vmem:[%s960_s16 + $0x248] sm:$0xff] %v411_v40  ;;  %464 = vst [vmem:[%s960_s16 + $0x148] sm:$0xff] %v379_v41 }
 0x14d   : > { %v412_v42 = vpop.trf.xlu1  ;;  %v380_v43 = vpop.trf.xlu0 }
 0x14e   : > { %498 = vst [vmem:[%s960_s16 + $0x258] sm:$0xff] %v412_v42  ;;  %466 = vst [vmem:[%s960_s16 + $0x158] sm:$0xff] %v380_v43 }
 0x151   : > { %v413_v44 = vpop.trf.xlu1  ;;  %v381_v45 = vpop.trf.xlu0 }
 0x152   : > { %500 = vst [vmem:[%s960_s16 + $0x268] sm:$0xff] %v413_v44  ;;  %468 = vst [vmem:[%s960_s16 + $0x168] sm:$0xff] %v381_v45 }
 0x155   : > { %v414_v46 = vpop.trf.xlu1  ;;  %v382_v47 = vpop.trf.xlu0 }
 0x156   : > { %502 = vst [vmem:[%s960_s16 + $0x278] sm:$0xff] %v414_v46  ;;  %470 = vst [vmem:[%s960_s16 + $0x178] sm:$0xff] %v382_v47 }
 0x159   : > { %v415_v48 = vpop.trf.xlu1  ;;  %v383_v49 = vpop.trf.xlu0 }
 0x15a   : > { %504 = vst [vmem:[%s960_s16 + $0x288] sm:$0xff] %v415_v48  ;;  %472 = vst [vmem:[%s960_s16 + $0x188] sm:$0xff] %v383_v49 }
 0x15d   : > { %v416_v50 = vpop.trf.xlu1  ;;  %v384_v51 = vpop.trf.xlu0 }
 0x15e   : > { %506 = vst [vmem:[%s960_s16 + $0x298] sm:$0xff] %v416_v50  ;;  %474 = vst [vmem:[%s960_s16 + $0x198] sm:$0xff] %v384_v51 }
 0x161   : > { %v417_v52 = vpop.trf.xlu1  ;;  %v385_v53 = vpop.trf.xlu0 }
 0x162   : > { %508 = vst [vmem:[%s960_s16 + $0x2a8] sm:$0xff] %v417_v52  ;;  %476 = vst [vmem:[%s960_s16 + $0x1a8] sm:$0xff] %v385_v53 }
 0x165   : > { %v418_v54 = vpop.trf.xlu1  ;;  %v386_v55 = vpop.trf.xlu0 }
 0x166   : > { %510 = vst [vmem:[%s960_s16 + $0x2b8] sm:$0xff] %v418_v54  ;;  %478 = vst [vmem:[%s960_s16 + $0x1b8] sm:$0xff] %v386_v55 }
 0x169   : > { %v419_v56 = vpop.trf.xlu1  ;;  %v387_v57 = vpop.trf.xlu0 }
 0x16a   : > { %512 = vst [vmem:[%s960_s16 + $0x2c8] sm:$0xff] %v419_v56  ;;  %480 = vst [vmem:[%s960_s16 + $0x1c8] sm:$0xff] %v387_v57 }
 0x16d   : > { %v420_v58 = vpop.trf.xlu1  ;;  %v388_v59 = vpop.trf.xlu0 }
 0x16e   : > { %514 = vst [vmem:[%s960_s16 + $0x2d8] sm:$0xff] %v420_v58  ;;  %482 = vst [vmem:[%s960_s16 + $0x1d8] sm:$0xff] %v388_v59 }
 0x171   : > { %v421_v60 = vpop.trf.xlu1  ;;  %v389_v61 = vpop.trf.xlu0 }
 0x172   : > { %516 = vst [vmem:[%s960_s16 + $0x2e8] sm:$0xff] %v421_v60  ;;  %484 = vst [vmem:[%s960_s16 + $0x1e8] sm:$0xff] %v389_v61 }
 0x175   : > { %v422_v62 = vpop.trf.xlu1  ;;  %v390_v63 = vpop.trf.xlu0 }
 0x176   : > { %518 = vst [vmem:[%s960_s16 + $0x2f8] sm:$0xff] %v422_v62  ;;  %486 = vst [vmem:[%s960_s16 + $0x1f8] sm:$0xff] %v390_v63 }
 0x177   : > { %711 = shalt.err (!%p708_p2)
}
 0x178   : > { %s712_s11 = scalar_lea.hbm %s1091_s30, 12288  ;;  %s716_s19 = scalar_lea.hbm %s1140_s1, 24576 }
 0x179   : > { %p713_p4 = scmp.ne.s32.totalorder %s1091_s30, %s712_s11  ;;  %p717_p9 = scmp.lt.u32.totalorder %s1091_s30, %s1140_s1 }
 0x17a   : > { %p718_p1 = scmp.lt.u32.totalorder %s716_s19, %s712_s11  ;;  %p720_p6 = scmp.lt.u32.totalorder %s712_s11, %s1091_s30 }
 0x17b   : > { %p714_p5 = pnand %p713_p4, %p1146_p11 }
 0x17c   : > { %p719_p3 = por %p718_p1, %p717_p9 }
 0x17d   : > { %p715_p7 = pneg %p714_p5 }
 0x17e   : > { %p721_p12 = por %p720_p6, %p719_p3 }
 0x180   : > { %p722_p13 = pnand %p721_p12, %p715_p7 }
 0x182   : > { %725 = shalt.err (!%p722_p13)
}
 0x183   : > { %s770_s23 = smov 256   ;;  %s771_s26 = smov 16  }
 0x184   : > { %620 = dma.vmem_to_hbm [thread:$0]  (%p1146_p11), %s1093_s25, 12288, %s1091_s30, %s520_s10, %s770_s23, %s770_s23, %s771_s26  }
 0x185 PF: > { %s548_s29 = sand.u32 1, %s752_s6   ;;  %p1147_p8 = scmp.ne.s32.totalorder %s1144_s18, 0 }
 0x186   : > { %p1148_p10 = scmp.ge.s32.totalorder %s764_s9, 2  ;;  %s549_s16 = scalar_lea.sflag [#allocation4], %s548_s29 }
 0x188   : > { %p627_p0 = pnand %p1148_p10, %p1147_p8 }
 0x18a   : > { %747 = dma.done.wait (!%p627_p0), %s549_s16, 12288  }
 0x18b   : > { %749 = vsyncadd (!%p627_p0), %s549_s16, 4294955008  ;;  %p14_p2 = scmp.ge.s32.totalorder %s807_s12, 4   ;;  %s1149_s6 = smov %s756_s7 }
 0x18c   : > { %s1150_s7 = smov %s760_s8  ;;  %s1151_s8 = smov %s819_s15 }
 0x18d   : > { %s1152_s9 = smov %s807_s12  ;;  %16 = sbr.rel (!%p14_p2) target bundleno = 5 (0x5), region = 69 }
 0x194   :  { %554 = vsyncpa [#allocation3], 1 }
 0x195   :  { %556 = vsyncpa [#allocation3 + $0x1], 1 }
 0x196   :  { %557 = vsyncpa [#allocation4], 1 }
 0x197   :  { %559 = vsyncpa [#allocation4 + $0x1], 1 }

</bundles_post_ra>
